<compile_context>
chip_gen: v7x
topology: tpu7x:2x2x1
jax: 0.10.0
libtpu: 0.0.40
codegen_flags: <defaults>
</compile_context>

<pallas_src>
import jax
import jax.numpy as jnp
from jax.experimental import pallas as pl
from jax.experimental.pallas import tpu as pltpu


def _mlp_kernel(x_ref, w1_ref, b1_ref, w2_ref, b2_ref, w3_ref, b3_ref,
                w4_ref, b4_ref, o_ref):
    # Fused hot path for one batch tile: 4 matmuls + bias + ReLU + sigmoid,
    # all operands resident in VMEM.
    x = x_ref[...]

    # Hoist the (tiny) bias rows once per grid step.
    b1 = b1_ref[...]
    b2 = b2_ref[...]
    b3 = b3_ref[...]
    b4 = b4_ref[...]

    h1 = jnp.dot(x, w1_ref[...], preferred_element_type=jnp.float32) + b1
    h1 = jnp.maximum(h1, 0.0)

    h2 = jnp.dot(h1, w2_ref[...], preferred_element_type=jnp.float32) + b2
    h2 = jnp.maximum(h2, 0.0)

    h3 = jnp.dot(h2, w3_ref[...], preferred_element_type=jnp.float32) + b3
    h3 = jnp.maximum(h3, 0.0)

    logits = jnp.dot(h3, w4_ref[...], preferred_element_type=jnp.float32) + b4

    # sigmoid -> exp + reciprocal on the EUP slot (free vs. VALU divide).
    o_ref[...] = jax.nn.sigmoid(logits).astype(o_ref.dtype)


def binary_network_forward(x, params, *, tb=8192):
    """x: (B, input_size) float32. params: dict from init_params.

    tb: batch tile size (rows of x per grid step). Large tiles (~0.5 MiB of x)
    amortize the per-step overhead; double-buffered they stay well inside the
    scoped VMEM limit on every generation (incl. v7x's 64 MiB).
    """
    b, in_size = x.shape
    out_size = params["w4"].shape[1]

    # Pick the batch tile: either the whole (small) batch, or a sublane-aligned
    # (multiple of 8) chunk of a large batch.
    if tb >= b:
        tb = b
    else:
        tb = max(8, (tb // 8) * 8)

    grid = (pl.cdiv(b, tb),)

    # x / output: tiled along batch, auto double-buffered by the pipeline.
    x_spec = pl.BlockSpec((tb, in_size), lambda i: (i, 0))
    out_spec = pl.BlockSpec((tb, out_size), lambda i: (i, 0))

    # Weights/biases: full arrays, constant index_map -> VMEM-resident across
    # all grid steps (single DMA each, no per-step re-fetch).
    def _resident(shape):
        return pl.BlockSpec(shape, lambda i: (0, 0))

    in_specs = [x_spec]
    for li in range(1, 5):
        in_specs.append(_resident(params[f"w{li}"].shape))
        in_specs.append(_resident(params[f"b{li}"].shape))

    return pl.pallas_call(
        _mlp_kernel,
        out_shape=jax.ShapeDtypeStruct((b, out_size), jnp.float32),
        grid=grid,
        in_specs=in_specs,
        out_specs=out_spec,
        compiler_params=pltpu.CompilerParams(
            dimension_semantics=("parallel",)),  # v7x megacore; no-op on v5e/v6e
    )(
        x,
        params["w1"], params["b1"],
        params["w2"], params["b2"],
        params["w3"], params["b3"],
        params["w4"], params["b4"],
    )


def init_params(key, input_size, output_size):
    """PyTorch-style Linear init: U(-1/sqrt(fan_in), 1/sqrt(fan_in)).

    Weights are stored transposed relative to torch, i.e. as (in, out)."""
    dims = [(input_size, 32), (32, 16), (16, 8), (8, output_size)]
    params = {}
    keys = jax.random.split(key, 2 * len(dims))
    for i, (fan_in, fan_out) in enumerate(dims):
        bound = 1.0 / jnp.sqrt(float(fan_in))
        w = jax.random.uniform(keys[2 * i], (fan_in, fan_out),
                               minval=-bound, maxval=bound, dtype=jnp.float32)
        bias = jax.random.uniform(keys[2 * i + 1], (1, fan_out),
                                  minval=-bound, maxval=bound, dtype=jnp.float32)
        params[f"w{i + 1}"] = w
        params[f"b{i + 1}"] = bias
    return params


def _reference(x, params):
    h = x
    for i in range(1, 4):
        h = jnp.maximum(h @ params[f"w{i}"] + params[f"b{i}"], 0.0)
    return jax.nn.sigmoid(h @ params["w4"] + params["b4"])


if __name__ == "__main__":
    key = jax.random.PRNGKey(0)
    k_param, k_x1, k_x2 = jax.random.split(key, 3)

    input_size = 16
    output_size = 1  # binary classification head
    params = init_params(k_param, input_size, output_size)

    # Small single-tile case (grid = 1).
    batch = 8
    x = jax.random.normal(k_x1, (batch, input_size), dtype=jnp.float32)
    y = binary_network_forward(x, params)
    jax.block_until_ready(y)
    assert y.shape == (batch, output_size)
    assert jnp.allclose(y, _reference(x, params), atol=1e-5), "mismatch (grid=1)"

    # Multi-tile case to exercise the batch grid (grid = 4 with tb=8).
    batch2 = 32
    x2 = jax.random.normal(k_x2, (batch2, input_size), dtype=jnp.float32)
    y2 = binary_network_forward(x2, params, tb=8)
    jax.block_until_ready(y2)
    assert y2.shape == (batch2, output_size)
    assert jnp.allclose(y2, _reference(x2, params), atol=1e-5), "mismatch (grid>1)"

    print("KERNEL_OK")
</pallas_src>

<mosaic_0001>
module attributes {stable_mosaic.version = 11 : i64} {
  func.func @_mlp_kernel(%arg0: i32, %arg1: memref<8x16xf32, #tpu.memory_space<vmem>>, %arg2: memref<16x32xf32, #tpu.memory_space<vmem>>, %arg3: memref<1x32xf32, #tpu.memory_space<vmem>>, %arg4: memref<32x16xf32, #tpu.memory_space<vmem>>, %arg5: memref<1x16xf32, #tpu.memory_space<vmem>>, %arg6: memref<16x8xf32, #tpu.memory_space<vmem>>, %arg7: memref<1x8xf32, #tpu.memory_space<vmem>>, %arg8: memref<8x1xf32, #tpu.memory_space<vmem>>, %arg9: memref<1x1xf32, #tpu.memory_space<vmem>>, %arg10: memref<8x1xf32, #tpu.memory_space<vmem>>) attributes {dimension_semantics = [#tpu.dimension_semantics<parallel>], iteration_bounds = array<i64: 1>, scalar_prefetch = 0 : i64, scratch_operands = 0 : i64, tpu.core_type = #tpu.core_type<tc>, window_params = [{transform_indices = @transform_0, window_bounds = array<i64: 8, 16>}, {pipeline_mode = #tpu.pipeline_mode<synchronous>, transform_indices = @transform_1, window_bounds = array<i64: 16, 32>}, {pipeline_mode = #tpu.pipeline_mode<synchronous>, transform_indices = @transform_2, window_bounds = array<i64: 1, 32>}, {pipeline_mode = #tpu.pipeline_mode<synchronous>, transform_indices = @transform_3, window_bounds = array<i64: 32, 16>}, {pipeline_mode = #tpu.pipeline_mode<synchronous>, transform_indices = @transform_4, window_bounds = array<i64: 1, 16>}, {pipeline_mode = #tpu.pipeline_mode<synchronous>, transform_indices = @transform_5, window_bounds = array<i64: 16, 8>}, {pipeline_mode = #tpu.pipeline_mode<synchronous>, transform_indices = @transform_6, window_bounds = array<i64: 1, 8>}, {pipeline_mode = #tpu.pipeline_mode<synchronous>, transform_indices = @transform_7, window_bounds = array<i64: 8, 1>}, {pipeline_mode = #tpu.pipeline_mode<synchronous>, transform_indices = @transform_8, window_bounds = array<i64: 1, 1>}, {transform_indices = @transform_9, window_bounds = array<i64: 8, 1>}]} {
    %c0 = arith.constant 0 : index
    %c0_0 = arith.constant 0 : index
    %0 = vector.load %arg1[%c0, %c0_0] : memref<8x16xf32, #tpu.memory_space<vmem>>, vector<8x16xf32>
    %c0_1 = arith.constant 0 : index
    %c0_2 = arith.constant 0 : index
    %1 = vector.load %arg3[%c0_1, %c0_2] : memref<1x32xf32, #tpu.memory_space<vmem>>, vector<1x32xf32>
    %c0_3 = arith.constant 0 : index
    %c0_4 = arith.constant 0 : index
    %2 = vector.load %arg5[%c0_3, %c0_4] : memref<1x16xf32, #tpu.memory_space<vmem>>, vector<1x16xf32>
    %c0_5 = arith.constant 0 : index
    %c0_6 = arith.constant 0 : index
    %3 = vector.load %arg7[%c0_5, %c0_6] : memref<1x8xf32, #tpu.memory_space<vmem>>, vector<1x8xf32>
    %c0_7 = arith.constant 0 : index
    %c0_8 = arith.constant 0 : index
    %4 = vector.load %arg9[%c0_7, %c0_8] : memref<1x1xf32, #tpu.memory_space<vmem>>, vector<1x1xf32>
    %c0_9 = arith.constant 0 : index
    %c0_10 = arith.constant 0 : index
    %5 = vector.load %arg2[%c0_9, %c0_10] : memref<16x32xf32, #tpu.memory_space<vmem>>, vector<16x32xf32>
    %cst = arith.constant dense<0.000000e+00> : vector<8x32xf32>
    %6 = tpu.matmul %0, %5, %cst {dimension_numbers = #tpu.dot_dimension_numbers<[1], [0], [0], [1], [0, 0, 1, 1], [], []>} : vector<8x16xf32>, vector<16x32xf32>, vector<8x32xf32> -> vector<8x32xf32>
    %7 = vector.broadcast %1 : vector<1x32xf32> to vector<8x32xf32>
    %8 = arith.addf %6, %7 : vector<8x32xf32>
    %cst_11 = arith.constant 0.000000e+00 : f32
    %9 = vector.broadcast %cst_11 : f32 to vector<8x32xf32>
    %10 = arith.maximumf %8, %9 : vector<8x32xf32>
    %c0_12 = arith.constant 0 : index
    %c0_13 = arith.constant 0 : index
    %11 = vector.load %arg4[%c0_12, %c0_13] : memref<32x16xf32, #tpu.memory_space<vmem>>, vector<32x16xf32>
    %cst_14 = arith.constant dense<0.000000e+00> : vector<8x16xf32>
    %12 = tpu.matmul %10, %11, %cst_14 {dimension_numbers = #tpu.dot_dimension_numbers<[1], [0], [0], [1], [0, 0, 1, 1], [], []>} : vector<8x32xf32>, vector<32x16xf32>, vector<8x16xf32> -> vector<8x16xf32>
    %13 = vector.broadcast %2 : vector<1x16xf32> to vector<8x16xf32>
    %14 = arith.addf %12, %13 : vector<8x16xf32>
    %cst_15 = arith.constant 0.000000e+00 : f32
    %15 = vector.broadcast %cst_15 : f32 to vector<8x16xf32>
    %16 = arith.maximumf %14, %15 : vector<8x16xf32>
    %c0_16 = arith.constant 0 : index
    %c0_17 = arith.constant 0 : index
    %17 = vector.load %arg6[%c0_16, %c0_17] : memref<16x8xf32, #tpu.memory_space<vmem>>, vector<16x8xf32>
    %cst_18 = arith.constant dense<0.000000e+00> : vector<8x8xf32>
    %18 = tpu.matmul %16, %17, %cst_18 {dimension_numbers = #tpu.dot_dimension_numbers<[1], [0], [0], [1], [0, 0, 1, 1], [], []>} : vector<8x16xf32>, vector<16x8xf32>, vector<8x8xf32> -> vector<8x8xf32>
    %19 = vector.broadcast %3 : vector<1x8xf32> to vector<8x8xf32>
    %20 = arith.addf %18, %19 : vector<8x8xf32>
    %cst_19 = arith.constant 0.000000e+00 : f32
    %21 = vector.broadcast %cst_19 : f32 to vector<8x8xf32>
    %22 = arith.maximumf %20, %21 : vector<8x8xf32>
    %c0_20 = arith.constant 0 : index
    %c0_21 = arith.constant 0 : index
    %23 = vector.load %arg8[%c0_20, %c0_21] : memref<8x1xf32, #tpu.memory_space<vmem>>, vector<8x1xf32>
    %cst_22 = arith.constant dense<0.000000e+00> : vector<8x1xf32>
    %24 = tpu.matmul %22, %23, %cst_22 {dimension_numbers = #tpu.dot_dimension_numbers<[1], [0], [0], [1], [0, 0, 1, 1], [], []>} : vector<8x8xf32>, vector<8x1xf32>, vector<8x1xf32> -> vector<8x1xf32>
    %25 = vector.broadcast %4 : vector<1x1xf32> to vector<8x1xf32>
    %26 = arith.addf %24, %25 : vector<8x1xf32>
    %27 = arith.negf %26 : vector<8x1xf32>
    %28 = math.exp %27 : vector<8x1xf32>
    %cst_23 = arith.constant 1.000000e+00 : f32
    %29 = vector.broadcast %cst_23 : f32 to vector<8x1xf32>
    %30 = arith.addf %29, %28 : vector<8x1xf32>
    %31 = arith.divf %29, %30 : vector<8x1xf32>
    %c0_24 = arith.constant 0 : index
    %c0_25 = arith.constant 0 : index
    %32 = vector.load %arg10[%c0_24, %c0_25] : memref<8x1xf32, #tpu.memory_space<vmem>>, vector<8x1xf32>
    tpu.vector_store %arg10[%c0_24, %c0_25], %31 {strides = array<i32>} : memref<8x1xf32, #tpu.memory_space<vmem>>, vector<8x1xf32>,
    return
  }
  func.func @transform_0(%arg0: i32) -> (i32, i32) {
    %c0_i32 = arith.constant 0 : i32
    %c0_i32_0 = arith.constant 0 : i32
    return %arg0, %c0_i32 : i32, i32
  }
  func.func @transform_1(%arg0: i32) -> (i32, i32) {
    %c0_i32 = arith.constant 0 : i32
    %c0_i32_0 = arith.constant 0 : i32
    %c0_i32_1 = arith.constant 0 : i32
    return %c0_i32, %c0_i32_0 : i32, i32
  }
  func.func @transform_2(%arg0: i32) -> (i32, i32) {
    %c0_i32 = arith.constant 0 : i32
    %c0_i32_0 = arith.constant 0 : i32
    %c0_i32_1 = arith.constant 0 : i32
    return %c0_i32, %c0_i32_0 : i32, i32
  }
  func.func @transform_3(%arg0: i32) -> (i32, i32) {
    %c0_i32 = arith.constant 0 : i32
    %c0_i32_0 = arith.constant 0 : i32
    %c0_i32_1 = arith.constant 0 : i32
    return %c0_i32, %c0_i32_0 : i32, i32
  }
  func.func @transform_4(%arg0: i32) -> (i32, i32) {
    %c0_i32 = arith.constant 0 : i32
    %c0_i32_0 = arith.constant 0 : i32
    %c0_i32_1 = arith.constant 0 : i32
    return %c0_i32, %c0_i32_0 : i32, i32
  }
  func.func @transform_5(%arg0: i32) -> (i32, i32) {
    %c0_i32 = arith.constant 0 : i32
    %c0_i32_0 = arith.constant 0 : i32
    %c0_i32_1 = arith.constant 0 : i32
    return %c0_i32, %c0_i32_0 : i32, i32
  }
  func.func @transform_6(%arg0: i32) -> (i32, i32) {
    %c0_i32 = arith.constant 0 : i32
    %c0_i32_0 = arith.constant 0 : i32
    %c0_i32_1 = arith.constant 0 : i32
    return %c0_i32, %c0_i32_0 : i32, i32
  }
  func.func @transform_7(%arg0: i32) -> (i32, i32) {
    %c0_i32 = arith.constant 0 : i32
    %c0_i32_0 = arith.constant 0 : i32
    %c0_i32_1 = arith.constant 0 : i32
    return %c0_i32, %c0_i32_0 : i32, i32
  }
  func.func @transform_8(%arg0: i32) -> (i32, i32) {
    %c0_i32 = arith.constant 0 : i32
    %c0_i32_0 = arith.constant 0 : i32
    %c0_i32_1 = arith.constant 0 : i32
    return %c0_i32, %c0_i32_0 : i32, i32
  }
  func.func @transform_9(%arg0: i32) -> (i32, i32) {
    %c0_i32 = arith.constant 0 : i32
    %c0_i32_0 = arith.constant 0 : i32
    return %arg0, %c0_i32 : i32, i32
  }
}

</mosaic_0001>

<bundles_post_ra>
// kernel: tpu_custom_call.1
= control target key start
LH: loop header
LB: loop body
LE: loop exit
PB: predicated region body
PF: predicated region fallthrough
CT: control target
= control target key end

     0   :  { %v453_v0 = vmov 0.0|0.0   ;;  %vm454_vm0 = vmmov 0   ;;  %v455_v3 = vmov 0.0   ;;  %vm47_vm1 = vcmask 130048   ;;  %s557_s1 = inlined_call_operand.vmem [shape: f32[16,32], index: 1, kind: input, shape index: {}]   ;;  %s558_s3 = inlined_call_operand.vmem [shape: f32[32,16], index: 3, kind: input, shape index: {}]   ;;  %s559_s0 = inlined_call_operand.vmem [shape: f32[8,16], index: 0, kind: input, shape index: {}]   ;;  %s560_s2 = inlined_call_operand.vmem [shape: f32[1,32], index: 2, kind: input, shape index: {}]   ;;  %s561_s5 = inlined_call_operand.vmem [shape: f32[16,8], index: 5, kind: input, shape index: {}]   ;;  %s562_s4 = inlined_call_operand.vmem [shape: f32[1,16], index: 4, kind: input, shape index: {}]   ;;  %s563_s7 = inlined_call_operand.vmem [shape: f32[8,1], index: 7, kind: input, shape index: {}]   ;;  %s564_s8 = inlined_call_operand.<no memory space> [shape: f32[1,1], index: 8, kind: input, shape index: {}]   ;;  %s565_s6 = inlined_call_operand.vmem [shape: f32[1,8], index: 6, kind: input, shape index: {}]   ;;  %s566_s9 = inlined_call_operand.vmem [shape: f32[8,1], index: 9, kind: output, shape index: {}]  }
   0x1   :  { %434 = vmatprep.subr.bf16.mxu0 %v453_v0  ;;  %v39_v1 = vld [vmem:[%s557_s1] sm:$0xff]  ;;  %v40_v2 = vld [vmem:[%s557_s1 + $0x8] sm:$0xff]  ;;  %408 = vmatprep.mubr.msk.f32.mxu0 %vm454_vm0, %v455_v3  ;;  %v124_v9 = vld [vmem:[%s558_s3 + $0x10] sm:$0xff]  ;;  %vm132_vm2 = vcmask 261120   ;;  %v14_v26 = vstv %s564_s8  ;;  %vm296_vm3 = vcmask 64512   ;;  %vm376_vm4 = vcmask 7168  }
   0x2   :  { %v435_v4 = vpack.c.bf16 %v40_v2, %v39_v1  ;;  %437 = vmatprep.subr.bf16.mxu1 %v453_v0  ;;  %v122_v5 = vld [vmem:[%s558_s3] sm:$0xff]  ;;  %v123_v6 = vld [vmem:[%s558_s3 + $0x8] sm:$0xff]  ;;  %419 = vmatprep.mubr.msk.f32.mxu1 %vm454_vm0, %v455_v3  ;;  %v125_v10 = vld [vmem:[%s558_s3 + $0x18] sm:$0xff]  ;;  %15 = vst [vmem:[#allocation2] sm:$0x1] %v14_v26 }
   0x3   :  { %v438_v7 = vpack.c.bf16 %v123_v6, %v122_v5  ;;  %v34_v8 = vld [vmem:[%s559_s0] sm:$0xff]  ;;  %v441_v11 = vpack.c.bf16 %v125_v10, %v124_v9  ;;  %v208_v18 = vld [vmem:[%s561_s5 + $0x8] sm:$0xff] }
   0x4   :  { %436 = vmatpush3.bf16.msra.mxu0 %v435_v4  ;;  %v382_v12 = vld [vmem:[%s560_s2] ss:$0 sm:$0xff] }
   0x5   :  { %439 = vmatpush3.bf16.msra.mxu1 %v438_v7  ;;  %443 = vmatprep.subr.bf16.mxu0 %v453_v0  ;;  %v207_v17 = vld [vmem:[%s561_s5] sm:$0xff] }
   0x6   :  { %440 = vmatprep.subr.bf16.mxu1 %v453_v0  ;;  %v444_v19 = vpack.c.bf16 %v208_v18, %v207_v17  ;;  %v384_v20 = vld [vmem:[%s562_s4] ss:$0 sm:$0xff] }
   0x7   :  { %409 = vmatmul.mubr.msk.f32.vlgmr.msra.gmra.mrb[0].mxu0 %vm47_vm1, %v34_v8  ;;  %v289_v25 = vld [vmem:[%s563_s7] sm:$0xff] }
   0x8   :  { %426 = vmatprep.mubr.msk.f32.mxu0 %vm454_vm0, %v455_v3  ;;  %445 = vmatpush3.bf16.msra.mxu0 %v444_v19  ;;  %v386_v27 = vld [vmem:[%s565_s6] ss:$0 sm:$0xff] }
   0x9   :  { %442 = vmatpush3.bf16.msra.mxu1 %v441_v11  ;;  %429 = vmatprep.subr.mxu0 %v455_v3  ;;  %v388_v32 = vld [vmem:[#allocation2] ss:$0 sm:$0xff] }
  0xda   :  { %v117_v13 = vpop.f32.mrb[0].mxu0 }
  0xdb   :  { %v118_v14 = vadd.f32 %v382_v12, %v117_v13  ;;  %v410_v15 = vpop.f32.mrb[1].mxu0 }
  0xdd   :  { %v121_v16 = vmax.f32 %v118_v14, 0.0 }
  0xdf   :  { %420 = vmatmul.mubr.msk.f32.vlgmr.msra.gmra.mrb[0].mxu1 %vm132_vm2, %v121_v16 }
 0x1b2   :  { %v202_v21 = vpop.f32.mrb[0].mxu1 }
 0x1b3   :  { %v203_v22 = vadd.f32 %v384_v20, %v202_v21  ;;  %v421_v23 = vpop.f32.mrb[1].mxu1 }
 0x1b5   :  { %v206_v24 = vmax.f32 %v203_v22, 0.0 }
 0x1b7   :  { %427 = vmatmul.mubr.msk.f32.vlgmr.msra.gmra.mrb[2].mxu0 %vm47_vm1, %v206_v24 }
 0x1b8   :  { %431 = vmatprep.mubr.msk.f32.mxu0 %vm454_vm0, %v455_v3  ;;  %430 = vmatpush3.msra.mxu0 %v289_v25 }
 0x28a   :  { %v284_v28 = vpop.f32.mrb[2].mxu0 }
 0x28b   :  { %v285_v29 = vadd.f32 %v386_v27, %v284_v28  ;;  %v428_v30 = vpop.f32.mrb[3].mxu0 }
 0x28d   :  { %v288_v31 = vmax.f32 %v285_v29, 0.0 }
 0x28f   :  { %432 = vmatmul.mubr.msk.f32.vlgmr.msra.gmra.mrb[4].mxu0 %vm296_vm3, %v288_v31 }
 0x362   :  { %v366_v33 = vpop.f32.mrb[4].mxu0 }
 0x363   :  { %v367_v34 = vadd.f32 %v388_v32, %v366_v33  ;;  %v433_v35 = vpop.f32.mrb[5].mxu0 }
 0x365   :  { %v390_v36 = vmul.f32 -1.442695, %v367_v34 }
 0x367   :  { %449 = vpow2.f32 %v390_v36 }
 0x371   :  { %v450_v37 = vpop.eup %449 }
 0x372   :  { %v373_v38 = vadd.f32 1.0, %v450_v37 }
 0x374   :  { %451 = vrcp.f32 %v373_v38 }
 0x37e   :  { %v452_v39 = vpop.eup %451 }
 0x37f   :  { %377 = vst.msk [vmem:[%s566_s9] sm:$0xff] %vm376_vm4, %v452_v39 }

</bundles_post_ra>
